<compile_context>
chip_gen: v7x
topology: tpu7x:2x2x1
jax: 0.10.0
libtpu: 0.0.40
codegen_flags: <defaults>
</compile_context>

<pallas_src>
import functools

import jax
import jax.numpy as jnp
from jax.experimental import pallas as pl
from jax.experimental.pallas import tpu as pltpu


def _rollout_kernel(n_action,
                    x_ref, h0_ref, wgx_ref, wgh_ref, bg_ref, wh_ref, bh_ref,
                    h_out_ref, pv_ref,
                    h_scr):
    """One grid step = one rollout step for one batch tile.

    x_ref   : [1, bt, Spad]  f32   padded state for step t
    h0_ref  : [bt, H]        f32   initial recurrent state (read at t == 0 only)
    wgx_ref : [Spad, 4H]     bf16  x-path GRU weights, gate slabs [r | z | n_x | 0]
    wgh_ref : [H, 4H]        bf16  h-path GRU weights, gate slabs [r | z | 0 | n_h]
    bg_ref  : [1, 4H]        f32   fused GRU bias [b_ir+b_hr | b_iz+b_hz | b_in | b_hn]
    wh_ref  : [H, Apad]      bf16  merged head weights, cols [pi_0..pi_{A-1}, V, 0...]
    bh_ref  : [1, Apad]      f32   merged head bias
    h_out   : [1, bt, H]     f32   per-step hidden state
    pv_out  : [1, bt, Apad]  f32   lanes 0:A = softmax probs, lane A = value, rest 0
    h_scr   : [bt, H]        f32   VMEM-resident hidden-state carry
    """
    H = h0_ref.shape[-1]

    # Load the initial recurrent state into the carry at the first time step.
    @pl.when(pl.program_id(1) == 0)
    def _():
        h_scr[...] = h0_ref[...]

    h = h_scr[...]                                   # [bt, H] f32 carry

    # --- GRU cell: two lane-aligned bf16 MXU pushes, f32 accumulation ------------
    xb = x_ref[0].astype(jnp.bfloat16)               # [bt, Spad]
    hb = h.astype(jnp.bfloat16)                      # [bt, H]
    g = (jnp.dot(xb, wgx_ref[...], preferred_element_type=jnp.float32)
         + jnp.dot(hb, wgh_ref[...], preferred_element_type=jnp.float32)
         + bg_ref[...])                              # [bt, 4H] f32
    r = jax.nn.sigmoid(g[:, 0:H])
    z = jax.nn.sigmoid(g[:, H:2 * H])
    n = jnp.tanh(g[:, 2 * H:3 * H] + r * g[:, 3 * H:4 * H])
    h_new = (1.0 - z) * n + z * h                    # [bt, H] f32

    h_scr[...] = h_new                               # carry to step t+1
    h_out_ref[0] = h_new.astype(h_out_ref.dtype)

    # --- merged policy + value head: one MXU push, lane-dense output slab --------
    head = (jnp.dot(h_new.astype(jnp.bfloat16), wh_ref[...],
                    preferred_element_type=jnp.float32)
            + bh_ref[...])                           # [bt, Apad] f32
    col = jax.lax.broadcasted_iota(jnp.int32, head.shape, 1)
    logits = jnp.where(col < n_action, head, -1e30)  # mask V + padding lanes
    m = jnp.max(logits, axis=-1, keepdims=True)
    e = jnp.exp(logits - m)                          # 0 in masked lanes
    s = jnp.sum(e, axis=-1, keepdims=True)
    probs = e / s                                    # exact: feeds Categorical
    # probs in lanes [0, A); raw value in lane A; zeros elsewhere.
    pv_ref[0] = jnp.where(col == n_action, head, probs).astype(pv_ref.dtype)


@functools.partial(jax.jit, static_argnames=("n_action", "batch_tile"))
def discrete_rnn_policy_value_rollout(h0, states, kparams, *, n_action,
                                      batch_tile=None):
    """Run the module forward over T consecutive steps in a single pallas_call.

    h0     : [B, H]     initial recurrent state
    states : [T, B, S]  observations for steps 0..T-1
    returns (h_seq [T, B, H], pv_seq [T, B, Apad]) — pv_seq is the lane-dense
    (probs | value | 0-pad) slab; slice with split_pv at the consumer.
    """
    T, B, S = states.shape
    H = h0.shape[-1]
    Spad = kparams["w_gx"].shape[0]
    Apad = kparams["w_head"].shape[1]

    # Pad batch to a full f32 sublane group and state features to a full lane
    # group ONCE per rollout (amortized over T steps).
    Bp = ((B + 7) // 8) * 8
    bt = Bp if batch_tile is None else batch_tile
    assert bt % 8 == 0 and Bp % bt == 0, "batch tile must be a multiple of 8 dividing padded batch"
    nb = Bp // bt

    x = jnp.zeros((T, Bp, Spad), jnp.float32).at[:, :B, :S].set(
        states.astype(jnp.float32))
    h0p = jnp.zeros((Bp, H), jnp.float32).at[:B].set(h0.astype(jnp.float32))

    flops = 2 * T * Bp * (Spad * 4 * H + H * 4 * H + H * Apad)
    transcendentals = T * Bp * (3 * H + Apad)
    bytes_accessed = ((Spad * 4 * H + H * 4 * H + H * Apad) * 2   # bf16 weights
                      + (4 * H + Apad) * 4                         # f32 biases
                      + Bp * H * 4                                 # h0
                      + T * Bp * (Spad + H + Apad) * 4)            # x in, h/pv out
    cost = pl.CostEstimate(flops=flops, transcendentals=transcendentals,
                           bytes_accessed=bytes_accessed)

    h_seq, pv = pl.pallas_call(
        functools.partial(_rollout_kernel, n_action),
        out_shape=(
            jax.ShapeDtypeStruct((T, Bp, H), jnp.float32),      # per-step hidden
            jax.ShapeDtypeStruct((T, Bp, Apad), jnp.float32),   # per-step [probs|v|0]
        ),
        grid_spec=pltpu.PrefetchScalarGridSpec(
            num_scalar_prefetch=0,
            grid=(nb, T),                                        # batch tiles, time
            in_specs=[
                pl.BlockSpec((1, bt, Spad), lambda b, t: (t, b, 0)),   # x_t
                pl.BlockSpec((bt, H), lambda b, t: (b, 0)),            # h0
                pl.BlockSpec((Spad, 4 * H), lambda b, t: (0, 0)),      # w_gx (resident)
                pl.BlockSpec((H, 4 * H), lambda b, t: (0, 0)),         # w_gh (resident)
                pl.BlockSpec((1, 4 * H), lambda b, t: (0, 0)),         # b_gru
                pl.BlockSpec((H, Apad), lambda b, t: (0, 0)),          # w_head (resident)
                pl.BlockSpec((1, Apad), lambda b, t: (0, 0)),          # b_head
            ],
            out_specs=(
                pl.BlockSpec((1, bt, H), lambda b, t: (t, b, 0)),
                pl.BlockSpec((1, bt, Apad), lambda b, t: (t, b, 0)),
            ),
            scratch_shapes=[pltpu.VMEM((bt, H), jnp.float32)],          # h carry
        ),
        compiler_params=pltpu.CompilerParams(
            dimension_semantics=("parallel", "arbitrary")),    # batch across TCs (v7x), time sequential
        cost_estimate=cost,
    )(x, h0p, kparams["w_gx"], kparams["w_gh"], kparams["b_gru"],
      kparams["w_head"], kparams["b_head"])

    if Bp != B:
        h_seq = h_seq[:, :B]
        pv = pv[:, :B]
    return h_seq, pv


def discrete_rnn_policy_value_step(recur_state, state, kparams, *, n_action):
    """Single-step forward matching the module signature: (h', pv_slab[B, Apad])."""
    h_seq, pv = discrete_rnn_policy_value_rollout(
        recur_state, state[None], kparams, n_action=n_action)
    return h_seq[0], pv[0]


def split_pv(pv, n_action):
    """Consumer-side slice of the lane-dense (probs | value | pad) slab."""
    return pv[..., :n_action], pv[..., n_action:n_action + 1]


def prepare_kernel_params(params, n_state, n_hidden, n_action, lane=128):
    """One-time re-layout of PyTorch-style parameters into kernel layout (bf16 weights)."""
    H, S, A = n_hidden, n_state, n_action
    s_pad = max(lane, pl.cdiv(S, lane) * lane)
    a_pad = max(lane, pl.cdiv(A + 1, lane) * lane)

    w_ih, w_hh = params["w_ih"], params["w_hh"]          # [3H, S], [3H, H]
    b_ih, b_hh = params["b_ih"], params["b_hh"]          # [3H], [3H]
    w_ir, w_iz, w_in = w_ih[:H], w_ih[H:2 * H], w_ih[2 * H:]
    w_hr, w_hz, w_hn = w_hh[:H], w_hh[H:2 * H], w_hh[2 * H:]
    b_ir, b_iz, b_in = b_ih[:H], b_ih[H:2 * H], b_ih[2 * H:]
    b_hr, b_hz, b_hn = b_hh[:H], b_hh[H:2 * H], b_hh[2 * H:]

    # x-path weights [Spad, 4H]: gate slabs [r | z | n_x | 0], rows S..Spad zero.
    w_gx = jnp.zeros((s_pad, 4 * H), jnp.float32)
    w_gx = w_gx.at[:S, 0:H].set(w_ir.T)
    w_gx = w_gx.at[:S, H:2 * H].set(w_iz.T)
    w_gx = w_gx.at[:S, 2 * H:3 * H].set(w_in.T)
    # h-path weights [H, 4H]: gate slabs [r | z | 0 | n_h].
    w_gh = jnp.zeros((H, 4 * H), jnp.float32)
    w_gh = w_gh.at[:, 0:H].set(w_hr.T)
    w_gh = w_gh.at[:, H:2 * H].set(w_hz.T)
    w_gh = w_gh.at[:, 3 * H:4 * H].set(w_hn.T)
    b_gru = jnp.concatenate([b_ir + b_hr, b_iz + b_hz, b_in, b_hn])[None, :]

    # Merged, lane-padded head: cols [pi (A), V (1), zero padding to `lane` multiple].
    w_head = jnp.zeros((H, a_pad), jnp.float32)
    w_head = w_head.at[:, :A].set(params["w_pi"].T)
    w_head = w_head.at[:, A].set(params["w_v"][0])
    b_head = jnp.zeros((1, a_pad), jnp.float32)
    b_head = b_head.at[0, :A].set(params["b_pi"])
    b_head = b_head.at[0, A].set(params["b_v"][0])

    return {"w_gx": w_gx.astype(jnp.bfloat16),
            "w_gh": w_gh.astype(jnp.bfloat16),
            "b_gru": b_gru.astype(jnp.float32),
            "w_head": w_head.astype(jnp.bfloat16),
            "b_head": b_head.astype(jnp.float32)}


def init_params(key, n_state, n_hidden, n_action):
    """Deterministic init mirroring PyTorch GRUCell / Linear uniform(-1/sqrt(fan), 1/sqrt(fan))."""
    ks = jax.random.split(key, 8)
    kg = 1.0 / jnp.sqrt(n_hidden)
    kp = 1.0 / jnp.sqrt(n_hidden)
    u = lambda k, shape, b: jax.random.uniform(k, shape, jnp.float32, -b, b)
    return {
        "w_ih": u(ks[0], (3 * n_hidden, n_state), kg),
        "w_hh": u(ks[1], (3 * n_hidden, n_hidden), kg),
        "b_ih": u(ks[2], (3 * n_hidden,), kg),
        "b_hh": u(ks[3], (3 * n_hidden,), kg),
        "w_pi": u(ks[4], (n_action, n_hidden), kp),
        "b_pi": u(ks[5], (n_action,), kp),
        "w_v": u(ks[6], (1, n_hidden), kp),
        "b_v": u(ks[7], (1,), kp),
    }


def _reference_rollout(h0, states, params):
    """Pure-JAX f32 reference: the PyTorch forward applied T times (sanity check)."""
    H = h0.shape[-1]

    def step(h, x):
        gx = x @ params["w_ih"].T + params["b_ih"]
        gh = h @ params["w_hh"].T + params["b_hh"]
        r = jax.nn.sigmoid(gx[:, :H] + gh[:, :H])
        z = jax.nn.sigmoid(gx[:, H:2 * H] + gh[:, H:2 * H])
        n = jnp.tanh(gx[:, 2 * H:] + r * gh[:, 2 * H:])
        h_new = (1.0 - z) * n + z * h
        logits = h_new @ params["w_pi"].T + params["b_pi"]
        probs = jax.nn.softmax(logits, axis=-1)
        v = h_new @ params["w_v"].T + params["b_v"]
        return h_new, (h_new, probs, v)

    _, (h_seq, p_seq, v_seq) = jax.lax.scan(step, h0, states)
    return h_seq, p_seq, v_seq


if __name__ == "__main__":
    T, B, N_STATE, N_HIDDEN, N_ACTION = 8, 8, 8, 128, 6   # n_hidden=128 is the module default

    key = jax.random.PRNGKey(0)
    k_h, k_x, k_p = jax.random.split(key, 3)
    h0 = jax.random.normal(k_h, (B, N_HIDDEN), jnp.float32)
    states = jax.random.normal(k_x, (T, B, N_STATE), jnp.float32)
    params = init_params(k_p, N_STATE, N_HIDDEN, N_ACTION)
    kparams = prepare_kernel_params(params, N_STATE, N_HIDDEN, N_ACTION)

    # Multi-step rollout: one pallas_call, weights resident, h carried in VMEM.
    h_seq, pv_seq = discrete_rnn_policy_value_rollout(h0, states, kparams,
                                                      n_action=N_ACTION)
    jax.block_until_ready((h_seq, pv_seq))
    probs, v = split_pv(pv_seq, N_ACTION)

    # Sanity check against the pure-f32 reference.  Tolerance covers bf16 weight /
    # activation rounding on the MXU accumulated over the 8-step recurrence.
    h_ref, p_ref, v_ref = _reference_rollout(h0, states, params)
    tol = dict(atol=5e-2, rtol=5e-2)
    assert jnp.allclose(h_seq, h_ref, **tol), "hidden state mismatch"
    assert jnp.allclose(probs, p_ref, **tol), "policy probs mismatch"
    assert jnp.allclose(v, v_ref, **tol), "value mismatch"
    assert jnp.allclose(probs.sum(-1), 1.0, atol=1e-5), "probs not normalized"

    # Single-step forward (module signature) also works and matches step 0.
    h1, pv1 = discrete_rnn_policy_value_step(h0, states[0], kparams, n_action=N_ACTION)
    jax.block_until_ready((h1, pv1))
    assert jnp.allclose(h1, h_ref[0], atol=2e-2, rtol=2e-2), "single-step hidden mismatch"

    # TODO(synk): Categorical sampling / ActionDistribution.log_prob/entropy are host-side
    # distribution bookkeeping, not part of the kernel; the kernel returns their probs.
    print("KERNEL_OK")
</pallas_src>

<mosaic_0001>
module attributes {stable_mosaic.version = 11 : i64} {
  func.func @_rollout_kernel(%arg0: i32, %arg1: i32, %arg2: memref<1x8x128xf32, #tpu.memory_space<vmem>>, %arg3: memref<8x128xf32, #tpu.memory_space<vmem>>, %arg4: memref<128x512xbf16, #tpu.memory_space<vmem>>, %arg5: memref<128x512xbf16, #tpu.memory_space<vmem>>, %arg6: memref<1x512xf32, #tpu.memory_space<vmem>>, %arg7: memref<128x128xbf16, #tpu.memory_space<vmem>>, %arg8: memref<1x128xf32, #tpu.memory_space<vmem>>, %arg9: memref<1x8x128xf32, #tpu.memory_space<vmem>>, %arg10: memref<1x8x128xf32, #tpu.memory_space<vmem>>, %arg11: memref<8x128xf32, #tpu.memory_space<vmem>>) attributes {dimension_semantics = [#tpu.dimension_semantics<parallel>, #tpu.dimension_semantics<arbitrary>], iteration_bounds = array<i64: 1, 8>, scalar_prefetch = 0 : i64, scratch_operands = 1 : i64, tpu.core_type = #tpu.core_type<tc>, window_params = [{transform_indices = @transform_0, window_bounds = array<i64: 1, 8, 128>}, {transform_indices = @transform_1, window_bounds = array<i64: 8, 128>}, {pipeline_mode = #tpu.pipeline_mode<synchronous>, transform_indices = @transform_2, window_bounds = array<i64: 128, 512>}, {pipeline_mode = #tpu.pipeline_mode<synchronous>, transform_indices = @transform_3, window_bounds = array<i64: 128, 512>}, {pipeline_mode = #tpu.pipeline_mode<synchronous>, transform_indices = @transform_4, window_bounds = array<i64: 1, 512>}, {pipeline_mode = #tpu.pipeline_mode<synchronous>, transform_indices = @transform_5, window_bounds = array<i64: 128, 128>}, {pipeline_mode = #tpu.pipeline_mode<synchronous>, transform_indices = @transform_6, window_bounds = array<i64: 1, 128>}, {transform_indices = @transform_7, window_bounds = array<i64: 1, 8, 128>}, {transform_indices = @transform_8, window_bounds = array<i64: 1, 8, 128>}]} {
    %c0_i32 = arith.constant 0 : i32
    %0 = arith.cmpi eq, %arg1, %c0_i32 : i32
    %1 = arith.extui %0 : i1 to i32
    %c0_i32_0 = arith.constant 0 : i32
    %2 = arith.cmpi ne, %1, %c0_i32_0 : i32
    scf.if %2 {
      %c0_32 = arith.constant 0 : index
      %c0_33 = arith.constant 0 : index
      %68 = vector.load %arg3[%c0_32, %c0_33] : memref<8x128xf32, #tpu.memory_space<vmem>>, vector<8x128xf32>
      %c0_34 = arith.constant 0 : index
      %c0_35 = arith.constant 0 : index
      %69 = vector.load %arg11[%c0_34, %c0_35] : memref<8x128xf32, #tpu.memory_space<vmem>>, vector<8x128xf32>
      tpu.vector_store %arg11[%c0_34, %c0_35], %68 {strides = array<i32>} : memref<8x128xf32, #tpu.memory_space<vmem>>, vector<8x128xf32>,
    } else {
    }
    %c0 = arith.constant 0 : index
    %c0_1 = arith.constant 0 : index
    %3 = vector.load %arg11[%c0, %c0_1] : memref<8x128xf32, #tpu.memory_space<vmem>>, vector<8x128xf32>
    %c0_2 = arith.constant 0 : index
    %c0_3 = arith.constant 0 : index
    %c0_4 = arith.constant 0 : index
    %4 = vector.load %arg2[%c0_2, %c0_3, %c0_4] : memref<1x8x128xf32, #tpu.memory_space<vmem>>, vector<1x8x128xf32>
    %5 = vector.shape_cast %4 : vector<1x8x128xf32> to vector<8x128xf32>
    %6 = arith.truncf %5 : vector<8x128xf32> to vector<8x128xbf16>
    %7 = arith.truncf %3 : vector<8x128xf32> to vector<8x128xbf16>
    %c0_5 = arith.constant 0 : index
    %c0_6 = arith.constant 0 : index
    %8 = vector.load %arg4[%c0_5, %c0_6] : memref<128x512xbf16, #tpu.memory_space<vmem>>, vector<128x512xbf16>
    %cst = arith.constant dense<0.000000e+00> : vector<8x512xf32>
    %9 = tpu.matmul %6, %8, %cst {dimension_numbers = #tpu.dot_dimension_numbers<[1], [0], [0], [1], [0, 0, 1, 1], [], []>} : vector<8x128xbf16>, vector<128x512xbf16>, vector<8x512xf32> -> vector<8x512xf32>
    %c0_7 = arith.constant 0 : index
    %c0_8 = arith.constant 0 : index
    %10 = vector.load %arg5[%c0_7, %c0_8] : memref<128x512xbf16, #tpu.memory_space<vmem>>, vector<128x512xbf16>
    %cst_9 = arith.constant dense<0.000000e+00> : vector<8x512xf32>
    %11 = tpu.matmul %7, %10, %cst_9 {dimension_numbers = #tpu.dot_dimension_numbers<[1], [0], [0], [1], [0, 0, 1, 1], [], []>} : vector<8x128xbf16>, vector<128x512xbf16>, vector<8x512xf32> -> vector<8x512xf32>
    %12 = arith.addf %9, %11 : vector<8x512xf32>
    %c0_10 = arith.constant 0 : index
    %c0_11 = arith.constant 0 : index
    %13 = vector.load %arg6[%c0_10, %c0_11] : memref<1x512xf32, #tpu.memory_space<vmem>>, vector<1x512xf32>
    %14 = vector.broadcast %13 : vector<1x512xf32> to vector<8x512xf32>
    %15 = arith.addf %12, %14 : vector<8x512xf32>
    %16 = vector.extract_strided_slice %15 {offsets = [0, 0], sizes = [8, 128], strides = [1, 1]} : vector<8x512xf32> to vector<8x128xf32>
    %17 = arith.negf %16 : vector<8x128xf32>
    %18 = math.exp %17 : vector<8x128xf32>
    %cst_12 = arith.constant 1.000000e+00 : f32
    %19 = vector.broadcast %cst_12 : f32 to vector<8x128xf32>
    %20 = arith.addf %19, %18 : vector<8x128xf32>
    %21 = arith.divf %19, %20 : vector<8x128xf32>
    %22 = vector.extract_strided_slice %15 {offsets = [0, 128], sizes = [8, 128], strides = [1, 1]} : vector<8x512xf32> to vector<8x128xf32>
    %23 = arith.negf %22 : vector<8x128xf32>
    %24 = math.exp %23 : vector<8x128xf32>
    %cst_13 = arith.constant 1.000000e+00 : f32
    %25 = vector.broadcast %cst_13 : f32 to vector<8x128xf32>
    %26 = arith.addf %25, %24 : vector<8x128xf32>
    %27 = arith.divf %25, %26 : vector<8x128xf32>
    %28 = vector.extract_strided_slice %15 {offsets = [0, 256], sizes = [8, 128], strides = [1, 1]} : vector<8x512xf32> to vector<8x128xf32>
    %29 = vector.extract_strided_slice %15 {offsets = [0, 384], sizes = [8, 128], strides = [1, 1]} : vector<8x512xf32> to vector<8x128xf32>
    %30 = arith.mulf %21, %29 : vector<8x128xf32>
    %31 = arith.addf %28, %30 : vector<8x128xf32>
    %32 = math.tanh %31 : vector<8x128xf32>
    %cst_14 = arith.constant 1.000000e+00 : f32
    %33 = vector.broadcast %cst_14 : f32 to vector<8x128xf32>
    %34 = arith.subf %33, %27 : vector<8x128xf32>
    %35 = arith.mulf %34, %32 : vector<8x128xf32>
    %36 = arith.mulf %27, %3 : vector<8x128xf32>
    %37 = arith.addf %35, %36 : vector<8x128xf32>
    %c0_15 = arith.constant 0 : index
    %c0_16 = arith.constant 0 : index
    %38 = vector.load %arg11[%c0_15, %c0_16] : memref<8x128xf32, #tpu.memory_space<vmem>>, vector<8x128xf32>
    tpu.vector_store %arg11[%c0_15, %c0_16], %37 {strides = array<i32>} : memref<8x128xf32, #tpu.memory_space<vmem>>, vector<8x128xf32>,
    %c0_17 = arith.constant 0 : index
    %c0_18 = arith.constant 0 : index
    %c0_19 = arith.constant 0 : index
    %39 = vector.load %arg9[%c0_17, %c0_18, %c0_19] : memref<1x8x128xf32, #tpu.memory_space<vmem>>, vector<1x8x128xf32>
    %40 = vector.shape_cast %39 : vector<1x8x128xf32> to vector<8x128xf32>
    %41 = vector.shape_cast %37 : vector<8x128xf32> to vector<1x8x128xf32>
    tpu.vector_store %arg9[%c0_17, %c0_18, %c0_19], %41 {strides = array<i32>} : memref<1x8x128xf32, #tpu.memory_space<vmem>>, vector<1x8x128xf32>,
    %42 = arith.truncf %37 : vector<8x128xf32> to vector<8x128xbf16>
    %c0_20 = arith.constant 0 : index
    %c0_21 = arith.constant 0 : index
    %43 = vector.load %arg7[%c0_20, %c0_21] : memref<128x128xbf16, #tpu.memory_space<vmem>>, vector<128x128xbf16>
    %cst_22 = arith.constant dense<0.000000e+00> : vector<8x128xf32>
    %44 = tpu.matmul %42, %43, %cst_22 {dimension_numbers = #tpu.dot_dimension_numbers<[1], [0], [0], [1], [0, 0, 1, 1], [], []>} : vector<8x128xbf16>, vector<128x128xbf16>, vector<8x128xf32> -> vector<8x128xf32>
    %c0_23 = arith.constant 0 : index
    %c0_24 = arith.constant 0 : index
    %45 = vector.load %arg8[%c0_23, %c0_24] : memref<1x128xf32, #tpu.memory_space<vmem>>, vector<1x128xf32>
    %46 = vector.broadcast %45 : vector<1x128xf32> to vector<8x128xf32>
    %47 = arith.addf %44, %46 : vector<8x128xf32>
    %48 = tpu.iota {dimensions = array<i32: 1>} : vector<8x128xi32>
    %c6_i32 = arith.constant 6 : i32
    %49 = vector.broadcast %c6_i32 : i32 to vector<8x128xi32>
    %50 = arith.cmpi slt, %48, %49 : vector<8x128xi32>
    %cst_25 = arith.constant -1.000000e+30 : f32
    %51 = vector.broadcast %cst_25 : f32 to vector<8x128xf32>
    %52 = arith.select %50, %47, %51 : vector<8x128xi1>, vector<8x128xf32>
    %cst_26 = arith.constant dense<0xFF800000> : vector<8xf32>
    %53 = vector.multi_reduction <maximumf>, %52, %cst_26 [1] : vector<8x128xf32> to vector<8xf32>
    %54 = vector.shape_cast %53 : vector<8xf32> to vector<8x1xf32>
    %55 = vector.broadcast %54 : vector<8x1xf32> to vector<8x128xf32>
    %56 = arith.subf %52, %55 : vector<8x128xf32>
    %57 = math.exp %56 : vector<8x128xf32>
    %cst_27 = arith.constant dense<0.000000e+00> : vector<8xf32>
    %58 = vector.multi_reduction <add>, %57, %cst_27 [1] : vector<8x128xf32> to vector<8xf32>
    %59 = vector.shape_cast %58 : vector<8xf32> to vector<8x1xf32>
    %60 = vector.broadcast %59 : vector<8x1xf32> to vector<8x128xf32>
    %61 = arith.divf %57, %60 : vector<8x128xf32>
    %c6_i32_28 = arith.constant 6 : i32
    %62 = vector.broadcast %c6_i32_28 : i32 to vector<8x128xi32>
    %63 = arith.cmpi eq, %48, %62 : vector<8x128xi32>
    %64 = arith.select %63, %47, %61 : vector<8x128xi1>, vector<8x128xf32>
    %c0_29 = arith.constant 0 : index
    %c0_30 = arith.constant 0 : index
    %c0_31 = arith.constant 0 : index
    %65 = vector.load %arg10[%c0_29, %c0_30, %c0_31] : memref<1x8x128xf32, #tpu.memory_space<vmem>>, vector<1x8x128xf32>
    %66 = vector.shape_cast %65 : vector<1x8x128xf32> to vector<8x128xf32>
    %67 = vector.shape_cast %64 : vector<8x128xf32> to vector<1x8x128xf32>
    tpu.vector_store %arg10[%c0_29, %c0_30, %c0_31], %67 {strides = array<i32>} : memref<1x8x128xf32, #tpu.memory_space<vmem>>, vector<1x8x128xf32>,
    return
  }
  func.func @transform_0(%arg0: i32, %arg1: i32) -> (i32, i32, i32) {
    %c0_i32 = arith.constant 0 : i32
    %c0_i32_0 = arith.constant 0 : i32
    return %arg1, %arg0, %c0_i32 : i32, i32, i32
  }
  func.func @transform_1(%arg0: i32, %arg1: i32) -> (i32, i32) {
    %c0_i32 = arith.constant 0 : i32
    %c0_i32_0 = arith.constant 0 : i32
    return %arg0, %c0_i32 : i32, i32
  }
  func.func @transform_2(%arg0: i32, %arg1: i32) -> (i32, i32) {
    %c0_i32 = arith.constant 0 : i32
    %c0_i32_0 = arith.constant 0 : i32
    %c0_i32_1 = arith.constant 0 : i32
    return %c0_i32, %c0_i32_0 : i32, i32
  }
  func.func @transform_3(%arg0: i32, %arg1: i32) -> (i32, i32) {
    %c0_i32 = arith.constant 0 : i32
    %c0_i32_0 = arith.constant 0 : i32
    %c0_i32_1 = arith.constant 0 : i32
    return %c0_i32, %c0_i32_0 : i32, i32
  }
  func.func @transform_4(%arg0: i32, %arg1: i32) -> (i32, i32) {
    %c0_i32 = arith.constant 0 : i32
    %c0_i32_0 = arith.constant 0 : i32
    %c0_i32_1 = arith.constant 0 : i32
    return %c0_i32, %c0_i32_0 : i32, i32
  }
  func.func @transform_5(%arg0: i32, %arg1: i32) -> (i32, i32) {
    %c0_i32 = arith.constant 0 : i32
    %c0_i32_0 = arith.constant 0 : i32
    %c0_i32_1 = arith.constant 0 : i32
    return %c0_i32, %c0_i32_0 : i32, i32
  }
  func.func @transform_6(%arg0: i32, %arg1: i32) -> (i32, i32) {
    %c0_i32 = arith.constant 0 : i32
    %c0_i32_0 = arith.constant 0 : i32
    %c0_i32_1 = arith.constant 0 : i32
    return %c0_i32, %c0_i32_0 : i32, i32
  }
  func.func @transform_7(%arg0: i32, %arg1: i32) -> (i32, i32, i32) {
    %c0_i32 = arith.constant 0 : i32
    %c0_i32_0 = arith.constant 0 : i32
    return %arg1, %arg0, %c0_i32 : i32, i32, i32
  }
  func.func @transform_8(%arg0: i32, %arg1: i32) -> (i32, i32, i32) {
    %c0_i32 = arith.constant 0 : i32
    %c0_i32_0 = arith.constant 0 : i32
    return %arg1, %arg0, %c0_i32 : i32, i32, i32
  }
}

</mosaic_0001>

<bundles_post_ra>
// kernel: discrete_rnn_policy_value_rollout.1
= control target key start
LH: loop header
LB: loop body
LE: loop exit
PB: predicated region body
PF: predicated region fallthrough
CT: control target
= control target key end

     0   :  { %14 = vsyncpa [#allocation4], 0  ;;  %s2125_s0 = inlined_call_operand.vmem [shape: f32[8,8,128], index: 0, kind: input, shape index: {}]   ;;  %s2126_s1 = inlined_call_operand.vmem [shape: f32[8,128], index: 1, kind: input, shape index: {}]   ;;  %s2127_s2 = inlined_call_operand.hbm [shape: bf16[128,512], index: 2, kind: input, shape index: {}]   ;;  %s2128_s3 = inlined_call_operand.hbm [shape: bf16[128,512], index: 3, kind: input, shape index: {}]   ;;  %s2129_s4 = inlined_call_operand.vmem [shape: f32[1,512], index: 4, kind: input, shape index: {}]   ;;  %s2130_s5 = inlined_call_operand.vmem [shape: bf16[128,128], index: 5, kind: input, shape index: {}]   ;;  %s2131_s6 = inlined_call_operand.vmem [shape: f32[1,128], index: 6, kind: input, shape index: {}]   ;;  %s2132_s7 = inlined_call_operand.hbm [shape: f32[8,8,128], index: 7, kind: output, shape index: {0}]   ;;  %s2133_s8 = inlined_call_operand.hbm [shape: f32[8,8,128], index: 8, kind: output, shape index: {1}]  }
   0x1   :  { %15 = vsyncpa [#allocation7], 0 }
   0x2   :  { %16 = vsyncpa [#allocation5], 0 }
   0x3   :  { %18 = vsyncpa [#allocation5 + $0x1], 0 }
   0x4   :  { %19 = vsyncpa [#allocation10], 0 }
   0x5   :  { %21 = vsyncpa [#allocation10 + $0x1], 0  ;;  %s1853_s27 = smov 0   ;;  %s1855_s28 = smov 0  }
   0x6   :  { %s1857_s29 = smov 0   ;;  %s1859_s30 = smov 0  }
   0x7   :  { %s1861_s9 = smov 0   ;;  %s1863_s10 = smov 0  }
   0x8 LB: > { %2141 = sst [smem:[#allocation15_spill]] %s1785_s29  ;;  %s1295_s11 = sadd.s32 4294967295, %s1797_s10   ;;  %s1797_s10 = sphi %s1863_s10, %s27_s10   ;;  %s1793_s9 = sphi %s1861_s9, %s2157_s9   ;;  %s1789_s30 = sphi %s1859_s30, %s2156_s30   ;;  %s1785_s29 = sphi %s1857_s29, %s2155_s29   ;;  %s1781_s28 = sphi %s1855_s28, %s2159_s28   ;;  %s1777_s27 = sphi %s1853_s27, %s2158_s27  }
   0x9   : > { %2142 = sst [smem:[#allocation16_spill]] %s1793_s9  ;;  %s1296_s12 = sadd.s32 4294967294, %s1797_s10  }
   0xa   : > { %s36_s13 = sadd.s32 1, %s1793_s9  ;;  %s207_s14 = sadd.s32 1, %s1785_s29 }
   0xb   : > { %p37_p0 = scmp.ge.s32.totalorder %s36_s13, 8  ;;  %p217_p1 = scmp.ne.s32.totalorder %s1785_s29, %s1781_s28 }
   0xc   : > { %p218_p2 = scmp.eq.s32.totalorder %s1295_s11, 7  ;;  %p223_p3 = scmp.ne.s32.totalorder %s1781_s28, %s1777_s27 }
   0xd   : > { %s2161_s13 = smov (%p37_p0, %s36_s13), 0  ;;  %p224_p5 = scmp.eq.s32.totalorder %s1296_s12, 7 }
   0xe   : > { %2143 = sst [smem:[#allocation17_spill]] %s2161_s13  ;;  %p1893_p4 = por %p218_p2, %p217_p1 }
   0xf   : > { %s202_s16 = ssub.s32 %s1793_s9, %s2161_s13  ;;  %p1297_p6 = scmp.ge.s32.totalorder %s1797_s10, 1 }
  0x10   : > { %s2144_s15 = scalar_select %p1893_p4, 1, 0 }
  0x11   : > { %p205_p7 = scmp.eq.s32.totalorder %s202_s16, 0  ;;  %p1900_p8 = por %p224_p5, %p223_p3 }
  0x12   : > { %p259_p9 = scmp.lt.s32.totalorder %s1797_s10, 9  ;;  %p1912_p11 = scmp.eq.s32.totalorder %s1295_s11, 0 }
  0x13   : > { %s2145_s17 = scalar_select %p1900_p8, 1, 0 }
  0x14   : > { %s1906_s18 = scalar_select %p205_p7, %s1785_s29, %s207_s14  }
  0x15   : > { %p1908_p10 = pnand %p1297_p6, %p259_p9  ;;  %s1799_s21 = smov [#allocation3]  }
  0x16   : > { %2146 = sst [smem:[#allocation18_spill]] %s1906_s18  ;;  %s278_s22 = sshll.u32 %s1799_s21, 4  ;;  %s279_s22 = int_to_ptr.vmem [resolvable:$true] %s278_s22 }
  0x17   : > { %s2147_s19 = scalar_select %p1908_p10, 1, 0 }
  0x18   : > { %s2148_s20 = scalar_select %p1912_p11, 1, 0 }
  0x19   : > { %p1431_p12 = pneg %p1908_p10  ;;  %s1800_s24 = smov [#allocation6]  }
  0x1a   : > { %s291_s25 = sshll.u32 %s1800_s24, 4  ;;  %s1623_s12 = scalar_lea.hbm %s2127_s2, 4096  ;;  %s1924_s25 = int_to_ptr.vmem [resolvable:$true] %s291_s25 }
  0x1b   : > { %p1920_p13 = pnand %p1912_p11, %p1431_p12  ;;  %p1624_p0 = scmp.ne.s32.totalorder %s2127_s2, %s1623_s12 }
  0x1c   : > { %p1630_p5 = scmp.lt.u32.totalorder %s1623_s12, %s2127_s2 }
  0x1d   : > { %p1625_p1 = pneg %p1920_p13 }
  0x1f   : > { %p1626_p2 = pnand %p1625_p1, %p1624_p0 }
  0x21   : > { %p1627_p3 = pneg %p1626_p2 }
  0x23   : > { %p1632_p6 = pnand %p1630_p5, %p1627_p3 }
  0x25   : > { %1635 = shalt.err (!%p1632_p6)
}
  0x26   : > { %s1636_s24 = scalar_lea.vmem %s279_s22, 4096  ;;  %p1644_p8 = scmp.lt.s32.totalorder %s279_s22, %s279_s22 }
  0x27   : > { %p1637_p7 = scmp.ne.s32.totalorder %s279_s22, %s1636_s24  ;;  %p1645_p4 = scmp.lt.s32.totalorder %s1636_s24, %s1636_s24 }
  0x29   : > { %p1639_p9 = pnand %p1637_p7, %p1625_p1  ;;  %p1646_p11 = por %p1645_p4, %p1644_p8 }
  0x2b   : > { %p1640_p12 = pneg %p1639_p9 }
  0x2d   : > { %p1647_p10 = pnand %p1646_p11, %p1640_p12 }
  0x2f   : > { %1650 = shalt.err (!%p1647_p10)
}
  0x30   : > { %s1801_s26 = smov 256   ;;  %s1802_s11 = smov 16  }
  0x31   : > { %1434 = dma.hbm_to_vmem [thread:$0]  (!%p1920_p13), %s2127_s2, 4096, %s279_s22, [#allocation4], %s1801_s26, %s1801_s26, %s1802_s11  }
  0x32   : > { %s1651_s21 = scalar_lea.hbm %s2128_s3, 4096 }
  0x33   : > { %p1652_p0 = scmp.ne.s32.totalorder %s2128_s3, %s1651_s21  ;;  %p1658_p10 = scmp.lt.u32.totalorder %s1651_s21, %s2128_s3 }
  0x35   : > { %p1654_p4 = pnand %p1652_p0, %p1625_p1 }
  0x37   : > { %p1655_p8 = pneg %p1654_p4 }
  0x39   : > { %p1660_p11 = pnand %p1658_p10, %p1655_p8 }
  0x3b   : > { %1663 = shalt.err (!%p1660_p11)
}
  0x3c   : > { %s1664_s22 = scalar_lea.vmem %s1924_s25, 4096  ;;  %p1672_p6 = scmp.lt.s32.totalorder %s1924_s25, %s1924_s25 }
  0x3d   : > { %p1665_p2 = scmp.ne.s32.totalorder %s1924_s25, %s1664_s22  ;;  %p1673_p7 = scmp.lt.s32.totalorder %s1664_s22, %s1664_s22 }
  0x3f   : > { %p1667_p3 = pnand %p1665_p2, %p1625_p1  ;;  %p1674_p9 = por %p1673_p7, %p1672_p6 }
  0x41   : > { %p1668_p5 = pneg %p1667_p3 }
  0x43   : > { %p1675_p12 = pnand %p1674_p9, %p1668_p5 }
  0x45   : > { %1678 = shalt.err (!%p1675_p12)
}
  0x46   : > { %1437 = dma.hbm_to_vmem [thread:$0]  (!%p1920_p13), %s2128_s3, 4096, %s1924_s25, [#allocation7], %s1801_s26, %s1801_s26, %s1802_s11  }
  0x47   : > { %p2150_p0 = scmp.ne.s32.totalorder %s2147_s19, 0 }
  0x48   : > { %p2151_p4 = scmp.ne.s32.totalorder (!%p2150_p0), %s2148_s20, 0 }
  0x49   : > { %326 = sbr.rel (%p2150_p0) target bundleno = 965 (0x3c5), region = 48 }
  0x50   : > { %1760 = dma.done.wait (%p2151_p4), [#allocation4], 4096  }
  0x51   : > { %1762 = vsyncadd (%p2151_p4), [#allocation4], 4294963200 }
  0x52   : > { %1764 = dma.done.wait (%p2151_p4), [#allocation7], 4096  }
  0x53   : > { %1766 = vsyncadd (%p2151_p4), [#allocation7], 4294963200  ;;  %s1984_s18 = sand.u32 1, %s1781_s28   ;;  %p375_p13 = scmp.lt.s32.totalorder %s1789_s30, 7 }
  0x54   : > { %s1305_s19 = sshll.u32 %s1984_s18, 3  ;;  %p1308_p1 = scmp.ne.s32.totalorder %s1789_s30, 0 }
  0x55   : > { %s376_s23 = scalar_select %p375_p13, %s1789_s30, 7 }
  0x56   : > { %s1994_s12 = scalar_lea.vmem [#allocation8], %s1305_s19  ;;  %s1996_s14 = scalar_lea.vmem [#allocation9], %s1305_s19  ;;  %v391_v0 = vld [vmem:[%s2126_s1] sm:$0xff] (!%p1308_p1) }
  0x57   : > { %s1307_s25 = sshll.u32 %s376_s23, 3  ;;  %390 = sbr.rel (%p1308_p1) target bundleno = 94 (0x5e), region = 60  ;;  %392 = vst [vmem:[#allocation2] sm:$0xff] (!%p1308_p1), %v391_v0 }
  0x58   : > { %s1992_s13 = scalar_lea.vmem %s2125_s0, %s1307_s25 }
  0x5e PF: > { %v1505_v1 = vld [vmem:[#allocation6 + $0x4] ss:$16 sps:$4 sm:$0xff]   ;;  %v1507_v2 = vld [vmem:[#allocation6 + $0xc] ss:$16 sps:$4 sm:$0xff]   ;;  %v1803_v3 = vmov 0   ;;  %vm1805_vm0 = vmmov 0  }
  0x5f   : > { %653 = vmatprep.mubr.bf16.mxu0 %v1803_v3  ;;  %694 = vmatprep.mubr.bf16.mxu1 %v1803_v3  ;;  %v1509_v4 = vld [vmem:[#allocation6] ss:$16 sps:$4 sm:$0xff]   ;;  %v1510_v5 = vld [vmem:[#allocation6 + $0x8] ss:$16 sps:$4 sm:$0xff]   ;;  %v1511_v6 = vld [vmem:[#allocation6 + $0x24] ss:$16 sps:$4 sm:$0xff]  }
  0x60   : > { %621 = vmatprep.subr.bf16.mxu0 %v1505_v1  ;;  %662 = vmatprep.subr.bf16.mxu1 %v1507_v2  ;;  %v1513_v7 = vld [vmem:[#allocation6 + $0x2c] ss:$16 sps:$4 sm:$0xff]   ;;  %v1515_v8 = vld [vmem:[#allocation6 + $0x20] ss:$16 sps:$4 sm:$0xff]   ;;  %v1516_v9 = vld [vmem:[#allocation6 + $0x28] ss:$16 sps:$4 sm:$0xff]  }
  0x61   : > { %622 = vmatpush1.bf16.msra.mxu0 %v1509_v4  ;;  %663 = vmatpush1.bf16.msra.mxu1 %v1510_v5  ;;  %v1517_v10 = vld [vmem:[#allocation6 + $0x44] ss:$16 sps:$4 sm:$0xff]   ;;  %v1519_v11 = vld [vmem:[#allocation6 + $0x4c] ss:$16 sps:$4 sm:$0xff]   ;;  %v1521_v12 = vld [vmem:[#allocation6 + $0x40] ss:$16 sps:$4 sm:$0xff]  }
  0x62   : > { %623 = vmatprep.subr.bf16.mxu0 %v1511_v6  ;;  %664 = vmatprep.subr.bf16.mxu1 %v1513_v7  ;;  %v1522_v13 = vld [vmem:[#allocation6 + $0x48] ss:$16 sps:$4 sm:$0xff]   ;;  %v1523_v14 = vld [vmem:[#allocation6 + $0x64] ss:$16 sps:$4 sm:$0xff]   ;;  %v1525_v15 = vld [vmem:[#allocation6 + $0x6c] ss:$16 sps:$4 sm:$0xff]  }
  0x63   : > { %v1527_v16 = vld [vmem:[#allocation6 + $0x60] ss:$16 sps:$4 sm:$0xff]   ;;  %v1528_v17 = vld [vmem:[#allocation6 + $0x68] ss:$16 sps:$4 sm:$0xff]   ;;  %v1529_v18 = vld [vmem:[#allocation6 + $0x84] ss:$16 sps:$4 sm:$0xff]  }
  0x64   : > { %v1531_v19 = vld [vmem:[#allocation6 + $0x8c] ss:$16 sps:$4 sm:$0xff]   ;;  %v1533_v20 = vld [vmem:[#allocation6 + $0x80] ss:$16 sps:$4 sm:$0xff]   ;;  %v1534_v21 = vld [vmem:[#allocation6 + $0x88] ss:$16 sps:$4 sm:$0xff]  }
  0x65   : > { %624 = vmatpush1.bf16.msra.mxu0 %v1515_v8  ;;  %665 = vmatpush1.bf16.msra.mxu1 %v1516_v9  ;;  %v1535_v22 = vld [vmem:[#allocation6 + $0xa4] ss:$16 sps:$4 sm:$0xff]   ;;  %v1537_v23 = vld [vmem:[#allocation6 + $0xac] ss:$16 sps:$4 sm:$0xff]   ;;  %v1539_v24 = vld [vmem:[#allocation6 + $0xa0] ss:$16 sps:$4 sm:$0xff]  }
  0x66   : > { %625 = vmatprep.subr.bf16.mxu0 %v1517_v10  ;;  %666 = vmatprep.subr.bf16.mxu1 %v1519_v11  ;;  %v1540_v25 = vld [vmem:[#allocation6 + $0xa8] ss:$16 sps:$4 sm:$0xff]   ;;  %v1541_v26 = vld [vmem:[#allocation6 + $0xc4] ss:$16 sps:$4 sm:$0xff]   ;;  %v1543_v27 = vld [vmem:[#allocation6 + $0xcc] ss:$16 sps:$4 sm:$0xff]  }
  0x67   : > { %v1545_v28 = vld [vmem:[#allocation6 + $0xc0] ss:$16 sps:$4 sm:$0xff]   ;;  %v1546_v29 = vld [vmem:[#allocation6 + $0xc8] ss:$16 sps:$4 sm:$0xff]   ;;  %v1547_v30 = vld [vmem:[#allocation6 + $0xe4] ss:$16 sps:$4 sm:$0xff]  }
  0x68   : > { %v1549_v31 = vld [vmem:[#allocation6 + $0xec] ss:$16 sps:$4 sm:$0xff]   ;;  %v1551_v32 = vld [vmem:[#allocation6 + $0xe0] ss:$16 sps:$4 sm:$0xff]   ;;  %v1552_v33 = vld [vmem:[#allocation6 + $0xe8] ss:$16 sps:$4 sm:$0xff]  }
  0x69   : > { %626 = vmatpush1.bf16.msra.mxu0 %v1521_v12  ;;  %667 = vmatpush1.bf16.msra.mxu1 %v1522_v13  ;;  %v2004_v34 = vld [vmem:[#allocation2] sm:$0xff]  ;;  %v1555_v35 = vld [vmem:[#allocation3 + $0x4] ss:$16 sps:$4 sm:$0xff]   ;;  %v1553_v38 = vld [vmem:[#allocation3] ss:$16 sps:$4 sm:$0xff]   ;;  %v1804_v7 = vmov 0.0  }
  0x6a   : > { %627 = vmatprep.subr.bf16.mxu0 %v1523_v14  ;;  %668 = vmatprep.subr.bf16.mxu1 %v1525_v15  ;;  %v1558_v36 = vld [vmem:[#allocation3 + $0xc] ss:$16 sps:$4 sm:$0xff]   ;;  %v396_v37 = vpack.c.bf16 %v2004_v34, %v2004_v34  ;;  %v1556_v39 = vld [vmem:[#allocation3 + $0x8] ss:$16 sps:$4 sm:$0xff]   ;;  %v1561_v40 = vld [vmem:[#allocation3 + $0x24] ss:$16 sps:$4 sm:$0xff]  }
  0x6b   : > { %v1564_v41 = vld [vmem:[#allocation3 + $0x2c] ss:$16 sps:$4 sm:$0xff]   ;;  %v1559_v42 = vld [vmem:[#allocation3 + $0x20] ss:$16 sps:$4 sm:$0xff]   ;;  %v1562_v43 = vld [vmem:[#allocation3 + $0x28] ss:$16 sps:$4 sm:$0xff]  }
  0x6c   : > { %v1567_v44 = vld [vmem:[#allocation3 + $0x44] ss:$16 sps:$4 sm:$0xff]   ;;  %v1570_v45 = vld [vmem:[#allocation3 + $0x4c] ss:$16 sps:$4 sm:$0xff]   ;;  %v1565_v46 = vld [vmem:[#allocation3 + $0x40] ss:$16 sps:$4 sm:$0xff]  }
  0x6d   : > { %628 = vmatpush1.bf16.msra.mxu0 %v1527_v16  ;;  %669 = vmatpush1.bf16.msra.mxu1 %v1528_v17  ;;  %v1568_v47 = vld [vmem:[#allocation3 + $0x48] ss:$16 sps:$4 sm:$0xff]   ;;  %v1573_v48 = vld [vmem:[#allocation3 + $0x64] ss:$16 sps:$4 sm:$0xff]   ;;  %v1576_v49 = vld [vmem:[#allocation3 + $0x6c] ss:$16 sps:$4 sm:$0xff]  }
  0x6e   : > { %629 = vmatprep.subr.bf16.mxu0 %v1529_v18  ;;  %670 = vmatprep.subr.bf16.mxu1 %v1531_v19  ;;  %v1571_v50 = vld [vmem:[#allocation3 + $0x60] ss:$16 sps:$4 sm:$0xff]   ;;  %v1574_v51 = vld [vmem:[#allocation3 + $0x68] ss:$16 sps:$4 sm:$0xff]   ;;  %v1579_v52 = vld [vmem:[#allocation3 + $0x84] ss:$16 sps:$4 sm:$0xff]  }
  0x6f   : > { %v1582_v53 = vld [vmem:[#allocation3 + $0x8c] ss:$16 sps:$4 sm:$0xff]   ;;  %v1577_v54 = vld [vmem:[#allocation3 + $0x80] ss:$16 sps:$4 sm:$0xff]   ;;  %v1580_v55 = vld [vmem:[#allocation3 + $0x88] ss:$16 sps:$4 sm:$0xff]  }
  0x70   : > { %v1585_v56 = vld [vmem:[#allocation3 + $0xa4] ss:$16 sps:$4 sm:$0xff]   ;;  %v1588_v57 = vld [vmem:[#allocation3 + $0xac] ss:$16 sps:$4 sm:$0xff]   ;;  %v1583_v58 = vld [vmem:[#allocation3 + $0xa0] ss:$16 sps:$4 sm:$0xff]  }
  0x71   : > { %630 = vmatpush1.bf16.msra.mxu0 %v1533_v20  ;;  %671 = vmatpush1.bf16.msra.mxu1 %v1534_v21  ;;  %v1586_v59 = vld [vmem:[#allocation3 + $0xa8] ss:$16 sps:$4 sm:$0xff]   ;;  %v1591_v60 = vld [vmem:[#allocation3 + $0xc4] ss:$16 sps:$4 sm:$0xff]   ;;  %v1594_v61 = vld [vmem:[#allocation3 + $0xcc] ss:$16 sps:$4 sm:$0xff]  }
  0x72   : > { %631 = vmatprep.subr.bf16.mxu0 %v1535_v22  ;;  %672 = vmatprep.subr.bf16.mxu1 %v1537_v23  ;;  %v1589_v62 = vld [vmem:[#allocation3 + $0xc0] ss:$16 sps:$4 sm:$0xff]   ;;  %v1592_v63 = vld [vmem:[#allocation3 + $0xc8] ss:$16 sps:$4 sm:$0xff]   ;;  %v1597_v0 = vld [vmem:[#allocation3 + $0xe4] ss:$16 sps:$4 sm:$0xff]   ;;  %v947_v23 = vlaneseq }
  0x73   : > { %v1600_v1 = vld [vmem:[#allocation3 + $0xec] ss:$16 sps:$4 sm:$0xff]   ;;  %v1595_v2 = vld [vmem:[#allocation3 + $0xe0] ss:$16 sps:$4 sm:$0xff]   ;;  %s1386_s25 = sshll.u32 %s1789_s30, 7  ;;  %s1140_s20 = sshll.u32 %s1994_s12, 4  ;;  %s1141_s20 = int_to_ptr.vmem [resolvable:$true] %s1140_s20 }
  0x74   : > { %v394_v4 = vld [vmem:[%s1992_s13] sm:$0xff]  ;;  %v1602_v8 = vld [vmem:[%s2130_s5 + $0x8] sm:$0xff]   ;;  %v1603_v9 = vld [vmem:[%s2130_s5 + $0x10] sm:$0xff]   ;;  %s2049_s13 = scalar_lea.hbm %s2132_s7, %s1386_s25  ;;  %s1121_s16 = scalar_lea.sflag [#allocation5], %s1984_s18 }
  0x75   : > { %632 = vmatpush1.bf16.msra.mxu0 %v1539_v24  ;;  %673 = vmatpush1.bf16.msra.mxu1 %v1540_v25  ;;  %v395_v5 = vpack.c.bf16 %v394_v4, %v394_v4  ;;  %v1601_v6 = vld [vmem:[%s2130_s5] sm:$0xff]   ;;  %v1604_v10 = vld [vmem:[%s2130_s5 + $0x18] sm:$0xff]   ;;  %v1606_v12 = vld [vmem:[%s2130_s5 + $0x28] sm:$0xff]   ;;  %v948_v24 = vshrl.u32 %v947_v23, 7  ;;  %s1679_s21 = scalar_lea.vmem %s1141_s20, 128  ;;  %p2152_p10 = scmp.ne.s32.totalorder %s2144_s15, 0 }
  0x76   : > { %633 = vmatprep.subr.bf16.mxu0 %v1541_v26  ;;  %674 = vmatprep.subr.bf16.mxu1 %v1543_v27  ;;  %v1605_v11 = vld [vmem:[%s2130_s5 + $0x20] sm:$0xff]   ;;  %v1607_v13 = vld [vmem:[%s2130_s5 + $0x30] sm:$0xff]   ;;  %v1608_v14 = vld [vmem:[%s2130_s5 + $0x38] sm:$0xff]   ;;  %p1680_p8 = scmp.ne.s32.totalorder %s1141_s20, %s1679_s21  ;;  %s1806_s24 = smov [#allocation8]  }
  0x77   : > { %v949_v25 = vsub.s32 0, %v948_v24  ;;  %v945_v26 = vld [vmem:[%s2129_s4] sm:$0xf]  ;;  %v953_v27 = vsub.s32 1, %v948_v24  ;;  %s1683_s22 = sshll.u32 %s1806_s24, 4  ;;  %s1684_s22 = int_to_ptr.vmem [resolvable:$false] %s1683_s22 }
  0x78   : > { %v1375_v4 = vld [vmem:[%s2131_s6] ss:$0 sm:$0xff]  ;;  %p1681_p11 = pnand %p1680_p8, %p2152_p10  ;;  %s1685_s29 = scalar_lea.vmem %s1684_s22, 256 }
  0x79   : > { %634 = vmatpush1.bf16.msra.mxu0 %v1545_v28  ;;  %675 = vmatpush1.bf16.msra.mxu1 %v1546_v29  ;;  %v950_v28 = vrot.slane %v945_v26, %v949_v25  ;;  %p1686_p3 = scmp.lt.s32.totalorder %s1141_s20, %s1684_s22  ;;  %p1687_p5 = scmp.lt.s32.totalorder %s1685_s29, %s1679_s21 }
  0x7a   : > { %635 = vmatprep.subr.bf16.mxu0 %v1547_v30  ;;  %676 = vmatprep.subr.bf16.mxu1 %v1549_v31  ;;  %p1682_p2 = pneg %p1681_p11 }
  0x7b   : > { %p1688_p6 = por %p1687_p5, %p1686_p3 }
  0x7d   : > { %636 = vmatpush1.bf16.msra.mxu0 %v1551_v32  ;;  %677 = vmatpush1.bf16.msra.mxu1 %v1552_v33  ;;  %p1689_p7 = pnand %p1688_p6, %p1682_p2 }
  0x7e   : > { %863 = vmatprep.subr.bf16.mxu0 %v1555_v35  ;;  %904 = vmatprep.subr.bf16.mxu1 %v1558_v36 }
  0x80   : > { %654 = vmatmul.mubr.bf16.vlgmr.msra.gmra.mrb[0].mxu0 %v396_v37  ;;  %695 = vmatmul.mubr.bf16.vlgmr.msra.gmra.mrb[0].mxu1 %v396_v37  ;;  %v954_v37 = vrot.slane %v945_v26, %v953_v27 }
  0x81   : > { %864 = vmatpush1.bf16.msra.mxu0 %v1553_v38  ;;  %905 = vmatpush1.bf16.msra.mxu1 %v1556_v39 }
  0x82   : > { %865 = vmatprep.subr.bf16.mxu0 %v1561_v40  ;;  %906 = vmatprep.subr.bf16.mxu1 %v1564_v41 }
  0x83   : > { %895 = vmatprep.mubr.bf16.mxu0 %v1803_v3  ;;  %936 = vmatprep.mubr.bf16.mxu1 %v1803_v3  ;;  %v1598_v3 = vld [vmem:[#allocation3 + $0xe8] ss:$16 sps:$4 sm:$0xff]  }
  0x85   : > { %866 = vmatpush1.bf16.msra.mxu0 %v1559_v42  ;;  %907 = vmatpush1.bf16.msra.mxu1 %v1562_v43 }
  0x86   : > { %867 = vmatprep.subr.bf16.mxu0 %v1567_v44  ;;  %908 = vmatprep.subr.bf16.mxu1 %v1570_v45 }
  0x89   : > { %868 = vmatpush1.bf16.msra.mxu0 %v1565_v46  ;;  %909 = vmatpush1.bf16.msra.mxu1 %v1568_v47 }
  0x8a   : > { %869 = vmatprep.subr.bf16.mxu0 %v1573_v48  ;;  %910 = vmatprep.subr.bf16.mxu1 %v1576_v49  ;;  %v961_v49 = vsub.s32 3, %v948_v24 }
  0x8d   : > { %870 = vmatpush1.bf16.msra.mxu0 %v1571_v50  ;;  %911 = vmatpush1.bf16.msra.mxu1 %v1574_v51  ;;  %v957_v50 = vsub.s32 2, %v948_v24 }
  0x8e   : > { %871 = vmatprep.subr.bf16.mxu0 %v1579_v52  ;;  %912 = vmatprep.subr.bf16.mxu1 %v1582_v53  ;;  %v962_v52 = vrot.slane %v945_v26, %v961_v49 }
  0x8f   : > { %v958_v53 = vrot.slane %v945_v26, %v957_v50 }
  0x91   : > { %872 = vmatpush1.bf16.msra.mxu0 %v1577_v54  ;;  %913 = vmatpush1.bf16.msra.mxu1 %v1580_v55 }
  0x92   : > { %873 = vmatprep.subr.bf16.mxu0 %v1585_v56  ;;  %914 = vmatprep.subr.bf16.mxu1 %v1588_v57 }
  0x95   : > { %874 = vmatpush1.bf16.msra.mxu0 %v1583_v58  ;;  %915 = vmatpush1.bf16.msra.mxu1 %v1586_v59 }
  0x96   : > { %875 = vmatprep.subr.bf16.mxu0 %v1591_v60  ;;  %916 = vmatprep.subr.bf16.mxu1 %v1594_v61 }
  0x99   : > { %876 = vmatpush1.bf16.msra.mxu0 %v1589_v62  ;;  %917 = vmatpush1.bf16.msra.mxu1 %v1592_v63 }
  0x9a   : > { %877 = vmatprep.subr.bf16.mxu0 %v1597_v0  ;;  %918 = vmatprep.subr.bf16.mxu1 %v1600_v1 }
  0x9d   : > { %878 = vmatpush1.bf16.msra.mxu0 %v1595_v2  ;;  %919 = vmatpush1.bf16.msra.mxu1 %v1598_v3  ;;  %v1105_v3 = vand.u32 127, %v947_v23 }
  0x9e   : > { %1399 = vmatprep.subr.bf16.mxu0 %v1804_v7 }
  0x9f   : > { %vm1106_vm1 = vcmp.lt.s32.totalorder %v1105_v3, 6 }
  0xa0   : > { %896 = vmatmul.mubr.bf16.vlgmr.msra.gmra.mrb[4].mxu0 %v395_v5  ;;  %937 = vmatmul.mubr.bf16.vlgmr.msra.gmra.mrb[4].mxu1 %v395_v5 }
  0xa1   : > { %1400 = vmatpush3.bf16.msra.mxu0 %v1601_v6  ;;  %1415 = vmatprep.mubr.msk.bf16.mxu0 %vm1805_vm0, %v1804_v7 }
  0xa2   : > { %1401 = vmatprep.subr.bf16.mxu0 %v1804_v7 }
  0xa5   : > { %1402 = vmatpush3.bf16.msra.mxu0 %v1602_v8 }
  0xa6   : > { %1403 = vmatprep.subr.bf16.mxu0 %v1804_v7 }
  0xa9   : > { %1404 = vmatpush3.bf16.msra.mxu0 %v1603_v9 }
  0xaa   : > { %1405 = vmatprep.subr.bf16.mxu0 %v1804_v7 }
  0xad   : > { %1406 = vmatpush3.bf16.msra.mxu0 %v1604_v10 }
  0xae   : > { %1407 = vmatprep.subr.bf16.mxu0 %v1804_v7 }
  0xb1   : > { %1408 = vmatpush3.bf16.msra.mxu0 %v1605_v11 }
  0xb2   : > { %1409 = vmatprep.subr.bf16.mxu0 %v1804_v7 }
  0xb5   : > { %1410 = vmatpush3.bf16.msra.mxu0 %v1606_v12 }
  0xb6   : > { %1411 = vmatprep.subr.bf16.mxu0 %v1804_v7 }
  0xb9   : > { %1412 = vmatpush3.bf16.msra.mxu0 %v1607_v13 }
  0xba   : > { %1413 = vmatprep.subr.bf16.mxu0 %v1804_v7 }
  0xbd   : > { %1414 = vmatpush3.bf16.msra.mxu0 %v1608_v14 }
 0x153   : > { %v655_v15 = vpop.f32.mrb[0].mxu0  ;;  %v696_v16 = vpop.f32.mrb[0].mxu1 }
 0x154   : > { %v657_v17 = vpop.f32.mrb[1].mxu0  ;;  %v698_v18 = vpop.f32.mrb[1].mxu1 }
 0x155   : > { %v659_v19 = vpop.f32.mrb[2].mxu0  ;;  %v700_v20 = vpop.f32.mrb[2].mxu1 }
 0x156   : > { %v660_v21 = vpop.f32.mrb[3].mxu0  ;;  %v701_v22 = vpop.f32.mrb[3].mxu1 }
 0x173   : > { %v897_v29 = vpop.f32.mrb[4].mxu0  ;;  %v938_v30 = vpop.f32.mrb[4].mxu1 }
 0x174   : > { %v898_v31 = vadd.f32 %v897_v29, %v655_v15  ;;  %v939_v32 = vadd.f32 %v938_v30, %v696_v16  ;;  %v899_v33 = vpop.f32.mrb[5].mxu0  ;;  %v940_v35 = vpop.f32.mrb[5].mxu1 }
 0x175   : > { %v900_v36 = vadd.f32 %v899_v33, %v657_v17  ;;  %v941_v38 = vadd.f32 %v940_v35, %v698_v18  ;;  %v901_v39 = vpop.f32.mrb[6].mxu0  ;;  %v942_v40 = vpop.f32.mrb[6].mxu1 }
 0x176   : > { %v967_v41 = vadd.f32 %v950_v28, %v898_v31  ;;  %v902_v42 = vpop.f32.mrb[7].mxu0  ;;  %v943_v43 = vpop.f32.mrb[7].mxu1  ;;  %v969_v57 = vadd.f32 %v958_v53, %v939_v32 }
 0x177   : > { %v968_v45 = vadd.f32 %v954_v37, %v900_v36  ;;  %v970_v55 = vadd.f32 %v962_v52, %v941_v38 }
 0x178   : > { %v1373_v44 = vmul.f32 -1.442695, %v967_v41 }
 0x179   : > { %v1374_v46 = vmul.f32 -1.442695, %v968_v45 }
 0x17a   : > { %1609 = vpow2.f32 %v1373_v44 }
 0x17b   : > { %1611 = vpow2.f32 %v1374_v46 }
 0x184   : > { %v1610_v47 = vpop.eup %1609 }
 0x185   : > { %v974_v48 = vadd.f32 1.0, %v1610_v47  ;;  %v1612_v51 = vpop.eup %1611 }
 0x186   : > { %v980_v54 = vadd.f32 1.0, %v1612_v51 }
 0x187   : > { %1613 = vrcp.f32 %v974_v48 }
 0x188   : > { %1615 = vrcp.f32 %v980_v54 }
 0x191   : > { %v1614_v56 = vpop.eup %1613 }
 0x192   : > { %v983_v58 = vmul.f32 %v1614_v56, %v970_v55  ;;  %v1616_v60 = vpop.eup %1615 }
 0x193   : > { %v986_v61 = vsub.f32 1.0, %v1616_v60  ;;  %v988_v0 = vmul.f32 %v1616_v60, %v2004_v34 }
 0x194   : > { %v984_v59 = vadd.f32 %v983_v58, %v969_v57 }
 0x196   : > { %1617 = vtanh.f32 %v984_v59 }
 0x1a0   : > { %v1618_v62 = vpop.eup %1617 }
 0x1a1   : > { %v987_v63 = vmul.f32 %v1618_v62, %v986_v61 }
 0x1a3   : > { %v989_v1 = vadd.f32 %v988_v0, %v987_v63 }
 0x1a5   : > { %990 = vst [vmem:[#allocation2] sm:$0xff] %v989_v1  ;;  %v992_v2 = vpack.c.bf16 %v989_v1, %v989_v1  ;;  %991 = vst [vmem:[%s1994_s12] sm:$0xff] %v989_v1 }
 0x1a7   : > { %1416 = vmatmul.mubr.bf16.vlgmr.msra.gmra.mrb[8].mxu0 %v992_v2 }
 0x27a   : > { %v1098_v5 = vpop.f32.mrb[8].mxu0 }
 0x27b   : > { %v1099_v6 = vadd.f32 %v1375_v4, %v1098_v5  ;;  %v1417_v7 = vpop.f32.mrb[9].mxu0 }
 0x27c   : > { %v1101_v8 = vpop.f32.mrb[10].mxu0 }
 0x27d   : > { %v1418_v34 = vpop.f32.mrb[11].mxu0  ;;  %v1107_v9 = vsel %vm1106_vm1, %v1099_v6, -1e+30 }
 0x27e   : > { %1108 = vmax.xlane.f32.xlu0 %v1107_v9 }
 0x30b   : > { %v1109_v10 = vpop.xlane.xlu0 %1108 }
 0x30c   : > { %v1110_v11 = vsub.f32 %v1107_v9, %v1109_v10 }
 0x30e   : > { %v1111_v12 = vmul.f32 1.442695, %v1110_v11 }
 0x310   : > { %1619 = vpow2.f32 %v1111_v12 }
 0x31a   : > { %v1620_v13 = vpop.eup %1619 }
 0x31b   : > { %1113 = vadd.xlane.f32.xlu0 %v1620_v13 }
 0x31c   : > { %1692 = shalt.err (!%p1689_p7)
}
 0x31d   : > { %s1693_s12 = scalar_lea.hbm %s2049_s13, 128  ;;  %s1697_s23 = scalar_lea.hbm %s2132_s7, 1024 }
 0x31e   : > { %p1694_p9 = scmp.ne.s32.totalorder %s2049_s13, %s1693_s12  ;;  %p1698_p4 = scmp.lt.u32.totalorder %s2049_s13, %s2132_s7 }
 0x31f   : > { %p1699_p13 = scmp.lt.u32.totalorder %s1697_s23, %s1693_s12  ;;  %p1701_p8 = scmp.lt.u32.totalorder %s1693_s12, %s2049_s13 }
 0x320   : > { %p1695_p12 = pnand %p1694_p9, %p2152_p10 }
 0x321   : > { %p1700_p1 = por %p1699_p13, %p1698_p4 }
 0x322   : > { %p1696_p0 = pneg %p1695_p12 }
 0x323   : > { %p1702_p11 = por %p1701_p8, %p1700_p1 }
 0x325   : > { %p1703_p2 = pnand %p1702_p11, %p1696_p0 }
 0x327   : > { %1706 = shalt.err (!%p1703_p2)
}
 0x328   : > { %1427 = dma.vmem_to_hbm [thread:$0]  (%p2152_p10), %s1141_s20, 128, %s2049_s13, %s1121_s16   ;;  %vm1117_vm2 = vcmp.eq.s32.totalorder %v1105_v3, 6 }
 0x329   : > { %s1154_s21 = sshll.u32 %s1996_s14, 4  ;;  %s2076_s29 = scalar_lea.hbm %s2133_s8, %s1386_s25  ;;  %s2078_s21 = int_to_ptr.vmem [resolvable:$true] %s1154_s21 }
 0x32a   : > { %s1126_s13 = scalar_lea.sflag [#allocation10], %s1984_s18  ;;  %s1707_s20 = scalar_lea.vmem %s2078_s21, 128 }
 0x32b   : > { %p1708_p3 = scmp.ne.s32.totalorder %s2078_s21, %s1707_s20  ;;  %s1807_s16 = smov [#allocation9]  }
 0x32c   : > { %s1711_s30 = sshll.u32 %s1807_s16, 4  ;;  %s1712_s30 = int_to_ptr.vmem [resolvable:$false] %s1711_s30 }
 0x32d   : > { %p1709_p5 = pnand %p1708_p3, %p2152_p10  ;;  %s1713_s12 = scalar_lea.vmem %s1712_s30, 256 }
 0x32e   : > { %p1714_p7 = scmp.lt.s32.totalorder %s2078_s21, %s1712_s30  ;;  %p1715_p9 = scmp.lt.s32.totalorder %s1713_s12, %s1707_s20 }
 0x32f   : > { %p1710_p6 = pneg %p1709_p5 }
 0x330   : > { %p1716_p12 = por %p1715_p9, %p1714_p7 }
 0x332   : > { %p1717_p0 = pnand %p1716_p12, %p1710_p6 }
 0x3a8   : > { %v1114_v14 = vpop.xlane.xlu0 %1113 }
 0x3a9   : > { %1621 = vrcp.f32 %v1114_v14 }
 0x3b3   : > { %v1622_v15 = vpop.eup %1621 }
 0x3b4   : > { %v1116_v16 = vmul.f32 %v1622_v15, %v1620_v13 }
 0x3b6   : > { %v1118_v17 = vsel %vm1117_vm2, %v1099_v6, %v1116_v16 }
 0x3b7   : > { %1119 = vst [vmem:[%s1996_s14] sm:$0xff] %v1118_v17 }
 0x3b8   : > { %1720 = shalt.err (!%p1717_p0)
}
 0x3b9   : > { %s1721_s18 = scalar_lea.hbm %s2076_s29, 128  ;;  %s1725_s9 = scalar_lea.hbm %s2133_s8, 1024 }
 0x3ba   : > { %p1722_p4 = scmp.ne.s32.totalorder %s2076_s29, %s1721_s18  ;;  %p1726_p8 = scmp.lt.u32.totalorder %s2076_s29, %s2133_s8 }
 0x3bb   : > { %p1727_p11 = scmp.lt.u32.totalorder %s1725_s9, %s1721_s18  ;;  %p1729_p3 = scmp.lt.u32.totalorder %s1721_s18, %s2076_s29 }
 0x3bc   : > { %p1723_p13 = pnand %p1722_p4, %p2152_p10 }
 0x3bd   : > { %p1728_p2 = por %p1727_p11, %p1726_p8 }
 0x3be   : > { %p1724_p1 = pneg %p1723_p13 }
 0x3bf   : > { %p1730_p5 = por %p1729_p3, %p1728_p2 }
 0x3c1   : > { %p1731_p6 = pnand %p1730_p5, %p1724_p1 }
 0x3c3   : > { %1734 = shalt.err (!%p1731_p6)
}
 0x3c4   : > { %1428 = dma.vmem_to_hbm [thread:$0]  (%p2152_p10), %s2078_s21, 128, %s2076_s29, %s1126_s13  }
 0x3c5 PF: > { %p1449_p7 = scmp.ge.s32.totalorder %s1797_s10, 2  ;;  %s1166_s26 = sand.u32 1, %s1777_s27  }
 0x3c6   : > { %p2153_p9 = scmp.ne.s32.totalorder %s2145_s17, 0  ;;  %s1167_s11 = scalar_lea.sflag [#allocation5], %s1166_s26 }
 0x3c8   : > { %p1439_p12 = pnand %p1449_p7, %p2153_p9 }
 0x3ca   : > { %1768 = dma.done.wait (!%p1439_p12), %s1167_s11, 128  }
 0x3cb   : > { %1770 = vsyncadd (!%p1439_p12), %s1167_s11, 4294967168  ;;  %s1176_s24 = scalar_lea.sflag [#allocation10], %s1166_s26 }
 0x3cc   : > { %1772 = dma.done.wait (!%p1439_p12), %s1176_s24, 128  }
 0x3cd   : > { %1774 = vsyncadd (!%p1439_p12), %s1176_s24, 4294967168  ;;  %s27_s10 = sadd.s32 1, %s1797_s10   ;;  %s2154_s15 = sld [smem:[#allocation15_spill]] }
 0x3ce   : > { %p24_p0 = scmp.ge.s32.totalorder %s27_s10, 10   ;;  %s2155_s29 = sld [smem:[#allocation18_spill]] }
 0x3cf   : > { %s2156_s30 = sld [smem:[#allocation16_spill]]  ;;  %s2157_s9 = sld [smem:[#allocation17_spill]] }
 0x3d0   : > { %s2158_s27 = smov %s1781_s28  ;;  %26 = sbr.rel (!%p24_p0) target bundleno = 8 (0x8), region = 116 }
 0x3d3   : > { %s2159_s28 = smov %s2154_s15 }
 0x3d7   :  { %1181 = vsyncpa [#allocation4], 1 }
 0x3d8   :  { %1183 = vsyncpa [#allocation4 + $0x1], 1 }
 0x3d9   :  { %1184 = vsyncpa [#allocation7], 1 }
 0x3da   :  { %1185 = vsyncpa [#allocation5], 1 }
 0x3db   :  { %1187 = vsyncpa [#allocation5 + $0x1], 1 }
 0x3dc   :  { %1188 = vsyncpa [#allocation10], 1 }
 0x3dd   :  { %1190 = vsyncpa [#allocation10 + $0x1], 1 }

</bundles_post_ra>
